<compile_context>
chip_gen: v7x
topology: tpu7x:2x2x1
jax: 0.10.0
libtpu: 0.0.40
codegen_flags: <defaults>
</compile_context>

<pallas_src>
import jax
import jax.numpy as jnp
from jax import lax
from jax.experimental import pallas as pl
from jax.experimental.pallas import tpu as pltpu


def _ceil_to(v, m):
    return -(-v // m) * m


def _floor_to(v, m):
    return (v // m) * m


def _make_lse_kernel(L, tile_l, need_l_mask):
    """Online logsumexp reduction over the L (lane) grid axis."""

    def kernel(x_ref, o_ref, m_scr, s_scr):
        k = pl.program_id(1)

        @pl.when(k == 0)
        def _():
            m_scr[...] = jnp.full_like(m_scr, -jnp.inf)
            s_scr[...] = jnp.zeros_like(s_scr)

        xt = x_ref[...]                                   # (tile_n, tile_l), input dtype
        if need_l_mask:
            # Last L block is partial: out-of-range lanes hold garbage -> mask to -inf.
            col = k * tile_l + lax.broadcasted_iota(jnp.int32, xt.shape, 1)
            xt = jnp.where(col < L, xt, jnp.asarray(-jnp.inf, dtype=xt.dtype))

        m_old = m_scr[...]                                              # (tile_n, 1) f32
        m_tile = jnp.max(xt, axis=-1, keepdims=True).astype(jnp.float32)
        m_new = jnp.maximum(m_old, m_tile)
        # Guard all-(-inf) rows: torch.logsumexp returns -inf, not NaN.
        m_safe = jnp.where(m_new == -jnp.inf, jnp.float32(0.0), m_new)

        # Subtract in the input dtype (uses the bf16 VPU on v6e/v7x); upcast only
        # the values feeding exp so the sum accumulates in f32.
        p = jnp.exp((xt - m_safe.astype(xt.dtype)).astype(jnp.float32))
        alpha = jnp.exp(m_old - m_safe)
        s_scr[...] = alpha * s_scr[...] + jnp.sum(p, axis=-1, keepdims=True)
        m_scr[...] = m_new

        @pl.when(k == pl.num_programs(1) - 1)
        def _():
            o_ref[...] = (m_scr[...] + jnp.log(s_scr[...])).astype(o_ref.dtype)

    return kernel


def pool_lse(x, *, target_block_bytes=2 * 1024 * 1024):
    """logsumexp over the last two dims of an NCHW tensor, keepdim=True."""
    B, C, H, W = x.shape
    N, L = B * C, H * W
    itemsize = jnp.dtype(x.dtype).itemsize
    sub = max(8, 32 // itemsize)          # sublane packing: 8 f32 / 16 bf16 / 32 int8

    # ---- lane (L) tile -------------------------------------------------------
    # Largest legal row count for a block (multiple of 8, or full N when N < 8).
    row_cap = _floor_to(N, 8) if N >= 8 else max(N, 1)
    # Size the lane tile so ~target_block_bytes is reachable with those rows
    # (at least 2048 lanes, multiple of 128).  Use full L when it already fits.
    tl = max(2048, _ceil_to(max(1, target_block_bytes // (min(row_cap, 1024) * itemsize)), 128))
    tile_l = L if L <= tl else tl
    n_lb = -(-L // tile_l)                # number of L blocks
    need_l_mask = (L % tile_l) != 0

    # ---- row (N) tile --------------------------------------------------------
    if N < 8:
        tile_n = N                        # full-extent block (layout-legal)
    else:
        budget_rows = max(8, target_block_bytes // (tile_l * itemsize))
        align = sub if (N >= sub and budget_rows >= sub) else 8
        tile_n = max(align, min(_floor_to(N, align), _floor_to(budget_rows, align)))
    n_rb = -(-N // tile_n)                # number of row blocks

    kernel = _make_lse_kernel(L, tile_l, need_l_mask)
    xf = x.reshape(N, L)

    out = pl.pallas_call(
        kernel,
        out_shape=jax.ShapeDtypeStruct((N, 1), x.dtype),
        grid_spec=pltpu.PrefetchScalarGridSpec(
            num_scalar_prefetch=0,
            grid=(n_rb, n_lb),                                   # reduction axis last
            in_specs=[pl.BlockSpec((tile_n, tile_l), lambda i, k: (i, k))],
            out_specs=pl.BlockSpec((tile_n, 1), lambda i, k: (i, 0)),
            scratch_shapes=[
                pltpu.VMEM((tile_n, 1), jnp.float32),            # running max
                pltpu.VMEM((tile_n, 1), jnp.float32),            # running sum
            ],
        ),
        compiler_params=pltpu.CompilerParams(
            dimension_semantics=("parallel", "arbitrary"),
            vmem_limit_bytes=32 * 1024 * 1024,
        ),
    )(xf)

    return out.reshape(B, C, 1, 1)


if __name__ == "__main__":
    key = jax.random.PRNGKey(0)

    # Small shape matching the PyTorch module's expected NCHW input.
    B, C, H, W = 2, 4, 16, 16
    x = jax.random.normal(key, (B, C, H, W), dtype=jnp.float32)
    y = pool_lse(x)
    jax.block_until_ready(y)
    ref = jax.scipy.special.logsumexp(x, axis=(-2, -1), keepdims=True)
    assert y.shape == (B, C, 1, 1), y.shape
    assert jnp.allclose(y, ref, atol=1e-5, rtol=1e-5)

    # Odd-sized shape: exercises L tiling + lane masking + partial row blocks
    # and the online-LSE accumulation path.
    B2, C2, H2, W2 = 4, 65, 50, 50
    x2 = jax.random.normal(jax.random.PRNGKey(1), (B2, C2, H2, W2), dtype=jnp.float32)
    y2 = pool_lse(x2)
    jax.block_until_ready(y2)
    ref2 = jax.scipy.special.logsumexp(x2, axis=(-2, -1), keepdims=True)
    assert y2.shape == (B2, C2, 1, 1), y2.shape
    assert jnp.allclose(y2, ref2, atol=1e-4, rtol=1e-5)

    print("KERNEL_OK")
</pallas_src>

<mosaic_0001>
module attributes {stable_mosaic.version = 11 : i64} {
  func.func @kernel(%arg0: i32, %arg1: i32, %arg2: memref<8x256xf32, #tpu.memory_space<vmem>>, %arg3: memref<8x1xf32, #tpu.memory_space<vmem>>, %arg4: memref<8x1xf32, #tpu.memory_space<vmem>>, %arg5: memref<8x1xf32, #tpu.memory_space<vmem>>) attributes {dimension_semantics = [#tpu.dimension_semantics<parallel>, #tpu.dimension_semantics<arbitrary>], iteration_bounds = array<i64: 1, 1>, scalar_prefetch = 0 : i64, scratch_operands = 2 : i64, tpu.core_type = #tpu.core_type<tc>, window_params = [{transform_indices = @transform_0, window_bounds = array<i64: 8, 256>}, {transform_indices = @transform_1, window_bounds = array<i64: 8, 1>}]} {
    %c0_i32 = arith.constant 0 : i32
    %0 = arith.cmpi eq, %arg1, %c0_i32 : i32
    %1 = arith.extui %0 : i1 to i32
    %c0_i32_0 = arith.constant 0 : i32
    %2 = arith.cmpi ne, %1, %c0_i32_0 : i32
    scf.if %2 {
      %cst_15 = arith.constant 0xFF800000 : f32
      %27 = vector.broadcast %cst_15 : f32 to vector<8x1xf32>
      %c0_16 = arith.constant 0 : index
      %c0_17 = arith.constant 0 : index
      %28 = vector.load %arg4[%c0_16, %c0_17] : memref<8x1xf32, #tpu.memory_space<vmem>>, vector<8x1xf32>
      tpu.vector_store %arg4[%c0_16, %c0_17], %27 {strides = array<i32>} : memref<8x1xf32, #tpu.memory_space<vmem>>, vector<8x1xf32>,
      %cst_18 = arith.constant 0.000000e+00 : f32
      %29 = vector.broadcast %cst_18 : f32 to vector<8x1xf32>
      %c0_19 = arith.constant 0 : index
      %c0_20 = arith.constant 0 : index
      %30 = vector.load %arg5[%c0_19, %c0_20] : memref<8x1xf32, #tpu.memory_space<vmem>>, vector<8x1xf32>
      tpu.vector_store %arg5[%c0_19, %c0_20], %29 {strides = array<i32>} : memref<8x1xf32, #tpu.memory_space<vmem>>, vector<8x1xf32>,
    } else {
    }
    %c0 = arith.constant 0 : index
    %c0_1 = arith.constant 0 : index
    %3 = vector.load %arg2[%c0, %c0_1] : memref<8x256xf32, #tpu.memory_space<vmem>>, vector<8x256xf32>
    %c0_2 = arith.constant 0 : index
    %c0_3 = arith.constant 0 : index
    %4 = vector.load %arg4[%c0_2, %c0_3] : memref<8x1xf32, #tpu.memory_space<vmem>>, vector<8x1xf32>
    %cst = arith.constant dense<0xFF800000> : vector<8xf32>
    %5 = vector.multi_reduction <maximumf>, %3, %cst [1] : vector<8x256xf32> to vector<8xf32>
    %6 = vector.shape_cast %5 : vector<8xf32> to vector<8x1xf32>
    %7 = arith.maximumf %4, %6 : vector<8x1xf32>
    %cst_4 = arith.constant 0xFF800000 : f32
    %8 = vector.broadcast %cst_4 : f32 to vector<8x1xf32>
    %9 = arith.cmpf oeq, %7, %8 : vector<8x1xf32>
    %cst_5 = arith.constant 0.000000e+00 : f32
    %10 = vector.broadcast %cst_5 : f32 to vector<8x1xf32>
    %11 = arith.select %9, %10, %7 : vector<8x1xi1>, vector<8x1xf32>
    %12 = vector.broadcast %11 : vector<8x1xf32> to vector<8x256xf32>
    %13 = arith.subf %3, %12 : vector<8x256xf32>
    %14 = math.exp %13 : vector<8x256xf32>
    %15 = arith.subf %4, %11 : vector<8x1xf32>
    %16 = math.exp %15 : vector<8x1xf32>
    %c0_6 = arith.constant 0 : index
    %c0_7 = arith.constant 0 : index
    %17 = vector.load %arg5[%c0_6, %c0_7] : memref<8x1xf32, #tpu.memory_space<vmem>>, vector<8x1xf32>
    %18 = arith.mulf %16, %17 : vector<8x1xf32>
    %cst_8 = arith.constant dense<0.000000e+00> : vector<8xf32>
    %19 = vector.multi_reduction <add>, %14, %cst_8 [1] : vector<8x256xf32> to vector<8xf32>
    %20 = vector.shape_cast %19 : vector<8xf32> to vector<8x1xf32>
    %21 = arith.addf %18, %20 : vector<8x1xf32>
    %c0_9 = arith.constant 0 : index
    %c0_10 = arith.constant 0 : index
    %22 = vector.load %arg5[%c0_9, %c0_10] : memref<8x1xf32, #tpu.memory_space<vmem>>, vector<8x1xf32>
    tpu.vector_store %arg5[%c0_9, %c0_10], %21 {strides = array<i32>} : memref<8x1xf32, #tpu.memory_space<vmem>>, vector<8x1xf32>,
    %c0_11 = arith.constant 0 : index
    %c0_12 = arith.constant 0 : index
    %23 = vector.load %arg4[%c0_11, %c0_12] : memref<8x1xf32, #tpu.memory_space<vmem>>, vector<8x1xf32>
    tpu.vector_store %arg4[%c0_11, %c0_12], %7 {strides = array<i32>} : memref<8x1xf32, #tpu.memory_space<vmem>>, vector<8x1xf32>,
    %c0_i32_13 = arith.constant 0 : i32
    %24 = arith.cmpi eq, %arg1, %c0_i32_13 : i32
    %25 = arith.extui %24 : i1 to i32
    %c0_i32_14 = arith.constant 0 : i32
    %26 = arith.cmpi ne, %25, %c0_i32_14 : i32
    scf.if %26 {
      %c0_15 = arith.constant 0 : index
      %c0_16 = arith.constant 0 : index
      %27 = vector.load %arg4[%c0_15, %c0_16] : memref<8x1xf32, #tpu.memory_space<vmem>>, vector<8x1xf32>
      %c0_17 = arith.constant 0 : index
      %c0_18 = arith.constant 0 : index
      %28 = vector.load %arg5[%c0_17, %c0_18] : memref<8x1xf32, #tpu.memory_space<vmem>>, vector<8x1xf32>
      %29 = math.log %28 : vector<8x1xf32>
      %30 = arith.addf %27, %29 : vector<8x1xf32>
      %c0_19 = arith.constant 0 : index
      %c0_20 = arith.constant 0 : index
      %31 = vector.load %arg3[%c0_19, %c0_20] : memref<8x1xf32, #tpu.memory_space<vmem>>, vector<8x1xf32>
      tpu.vector_store %arg3[%c0_19, %c0_20], %30 {strides = array<i32>} : memref<8x1xf32, #tpu.memory_space<vmem>>, vector<8x1xf32>,
    } else {
    }
    return
  }
  func.func @transform_0(%arg0: i32, %arg1: i32) -> (i32, i32) {
    %c0_i32 = arith.constant 0 : i32
    return %arg0, %arg1 : i32, i32
  }
  func.func @transform_1(%arg0: i32, %arg1: i32) -> (i32, i32) {
    %c0_i32 = arith.constant 0 : i32
    %c0_i32_0 = arith.constant 0 : i32
    return %arg0, %c0_i32 : i32, i32
  }
}

</mosaic_0001>

<bundles_post_ra>
// kernel: tpu_custom_call.1
= control target key start
LH: loop header
LB: loop body
LE: loop exit
PB: predicated region body
PF: predicated region fallthrough
CT: control target
= control target key end

     0   :  { %6 = vsyncpa [#allocation5], 0  ;;  %s110_s6 = smov [#allocation4]   ;;  %s144_s0 = inlined_call_operand.hbm [shape: f32[8,256], index: 0, kind: input, shape index: {}]   ;;  %s145_s1 = inlined_call_operand.vmem [shape: f32[8,1], index: 1, kind: output, shape index: {}]  }
   0x1   :  { %s13_s7 = sshll.u32 %s110_s6, 4  ;;  %s86_s10 = scalar_lea.hbm %s144_s0, 256  ;;  %s14_s7 = int_to_ptr.vmem [resolvable:$true] %s13_s7 }
   0x2   :  { %p87_p0 = scmp.ne.s32.totalorder %s144_s0, %s86_s10  ;;  %p90_p1 = scmp.lt.u32.totalorder %s86_s10, %s144_s0 }
   0x4   :  { %p92_p2 = pnand %p90_p1, %p87_p0 }
   0x6   :  { %95 = shalt.err (!%p92_p2)
}
   0x7   :  { %s96_s15 = scalar_lea.vmem %s14_s7, 256  ;;  %p101_p4 = scmp.lt.s32.totalorder %s14_s7, %s14_s7 }
   0x8   :  { %p97_p3 = scmp.ne.s32.totalorder %s14_s7, %s96_s15  ;;  %p102_p5 = scmp.lt.s32.totalorder %s96_s15, %s96_s15 }
   0xa   :  { %p103_p6 = por %p102_p5, %p101_p4 }
   0xc   :  { %p104_p7 = pnand %p103_p6, %p97_p3 }
   0xe   :  { %107 = shalt.err (!%p104_p7)
}
   0xf   :  { %16 = dma.hbm_to_vmem [thread:$0]  %s144_s0, 256, %s14_s7, [#allocation5]  }
  0x10   :  { %108 = dma.done.wait [#allocation5], 256  }
  0x11   :  { %109 = vsyncadd [#allocation5], 4294967040  ;;  %vm24_vm0 = vcmask 7168   ;;  %v111_v0 = vmov -inf   ;;  %v27_v1 = vld [vmem:[#allocation4] sm:$0xff]  ;;  %v28_v2 = vld [vmem:[#allocation4 + $0x8] sm:$0xff] }
  0x12   :  { %25 = vst.msk [vmem:[#allocation2] sm:$0xff] %vm24_vm0, %v111_v0  ;;  %v30_v3 = vmax.f32 %v27_v1, %v28_v2  ;;  %v112_v4 = vmov 0   ;;  %v113_v5 = vmov 0.0  }
  0x13   :  { %77 = vset.pattern.permute.xlu0 %v112_v4  ;;  %26 = vst.msk [vmem:[#allocation3] sm:$0xff] %vm24_vm0, %v113_v5 }
  0x14   :  { %31 = vmax.xlane.f32.xlu0 %v30_v3 }
  0x19   :  { %v29_v6 = vld [vmem:[#allocation2] sm:$0xff] }
  0x1a   :  { %v50_v21 = vld [vmem:[#allocation3] sm:$0xff] }
  0xa1   :  { %v32_v7 = vpop.xlane.xlu0 %31 }
  0xa2   :  { %v33_v8 = vmax.f32 %v29_v6, %v32_v7 }
  0xa4   :  { %58 = vst.msk [vmem:[#allocation2] sm:$0xff] %vm24_vm0, %v33_v8  ;;  %vm34_vm1 = vcmp.eq.f32.partialorder %v33_v8, -inf }
  0xa5   :  { %v35_v9 = vsel %vm34_vm1, 0.0, %v33_v8 }
  0xa6   :  { %38 = vperm.xlu0 %77, %v35_v9   ;;  %v47_v10 = vsub.f32 %v29_v6, %v35_v9 }
  0xa8   :  { %v48_v19 = vmul.f32 1.442695, %v47_v10 }
  0xab   :  { %v62_v28 = vld [vmem:[#allocation2] sm:$0xff] }
 0x125   :  { %v39_v11 = vpop.permute.xlu0 %38 }
 0x126   :  { %v41_v12 = vsub.f32 %v27_v1, %v39_v11  ;;  %v42_v13 = vsub.f32 %v28_v2, %v39_v11 }
 0x128   :  { %v43_v14 = vmul.f32 1.442695, %v41_v12  ;;  %v45_v15 = vmul.f32 1.442695, %v42_v13 }
 0x12a   :  { %78 = vpow2.f32 %v43_v14 }
 0x12b   :  { %80 = vpow2.f32 %v45_v15 }
 0x12c   :  { %82 = vpow2.f32 %v48_v19 }
 0x134   :  { %v79_v16 = vpop.eup %78 }
 0x135   :  { %v81_v17 = vpop.eup %80 }
 0x136   :  { %v52_v18 = vadd.f32 %v81_v17, %v79_v16  ;;  %v83_v20 = vpop.eup %82 }
 0x137   :  { %v51_v22 = vmul.f32 %v83_v20, %v50_v21 }
 0x138   :  { %53 = vadd.xlane.f32.xlu1 %v52_v18 }
 0x1c5   :  { %v54_v23 = vpop.xlane.xlu1 %53 }
 0x1c6   :  { %v55_v24 = vadd.f32 %v54_v23, %v51_v22 }
 0x1c8   :  { %57 = vst.msk [vmem:[#allocation3] sm:$0xff] %vm24_vm0, %v55_v24 }
 0x1cf   :  { %v63_v25 = vld [vmem:[#allocation3] sm:$0xff] }
 0x1d0   :  { %84 = vlog2.f32 %v63_v25 }
 0x1da   :  { %v85_v26 = vpop.eup %84 }
 0x1db   :  { %v65_v27 = vmul.f32 0.6931472, %v85_v26 }
 0x1dd   :  { %v66_v29 = vadd.f32 %v65_v27, %v62_v28 }
 0x1df   :  { %67 = vst.msk [vmem:[%s145_s1] sm:$0xff] %vm24_vm0, %v66_v29 }
 0x1e0   :  { %72 = vsyncpa [#allocation5], 1 }

</bundles_post_ra>
